<compile_context>
chip_gen: v5e
topology: v5e:2x2
jax: 0.10.0
libtpu: 0.0.40
codegen_flags: <defaults>
</compile_context>

<pallas_src>
import functools

import jax
import jax.numpy as jnp
from jax.experimental import pallas as pl
from jax.experimental.pallas import tpu as pltpu


# ---------------------------------------------------------------------------
# Kernel (shared by the single-example and batched entry points)
# ---------------------------------------------------------------------------
def _mha_kernel(xT_ref, y_ref, z_ref, wq_ref, wkT_ref, wvT_ref, o_ref, s_ref,
                *, x_heads, x_head_dim, seq_per_head):
    # Projections — biases are already folded into the augmented operands.
    # qT in (x_head_dim, Nx) layout so the per-head score matmuls are plain.
    qT = jnp.dot(wq_ref[...], xT_ref[...],
                 preferred_element_type=jnp.float32)          # (hd, Nx)
    k = jnp.dot(y_ref[...], wkT_ref[...],
                preferred_element_type=jnp.float32)           # (Ny, y_dim)
    v = jnp.dot(z_ref[...], wvT_ref[...],
                preferred_element_type=jnp.float32)           # (Nz, x_dim)

    # Per-head scores written directly into the (x_dim, y_dim) scratch slab.
    # Row block [h*hd, (h+1)*hd) reproduces attn_scores.view(h*d, -1) ordering.
    for h in range(x_heads):                                  # static, tiny unroll
        qhT = qT[:, h * seq_per_head:(h + 1) * seq_per_head]  # (hd, Ny)
        s_ref[h * x_head_dim:(h + 1) * x_head_dim, :] = jnp.dot(
            qhT, k, preferred_element_type=jnp.float32)       # (hd, y_dim)

    # softmax over the last dim of the flattened (x_dim, y_dim) score matrix.
    s = s_ref[...]
    s_max = jnp.max(s, axis=-1, keepdims=True)
    e = jnp.exp(s - s_max)
    denom = jnp.sum(e, axis=-1, keepdims=True)
    p = e * pl.reciprocal(denom, approx=True)                 # EUP, not VALU div

    # attn_output = squeeze(value_3d @ probs) = V @ P
    o_ref[...] = jnp.dot(v, p, preferred_element_type=jnp.float32)


# ---------------------------------------------------------------------------
# One-time parameter packing: fold each bias into its weight matrix.
# ---------------------------------------------------------------------------
def pack_params(params):
    wq, bq, wk, bk, wv, bv = params
    wq_aug = jnp.concatenate([wq, bq[:, None]], axis=1)        # (hd, x_dim+1)
    wkT_aug = jnp.concatenate([wk, bk[:, None]], axis=1).T     # (y_dim+1, y_dim)
    wvT_aug = jnp.concatenate([wv, bv[:, None]], axis=1).T     # (z_dim+1, x_dim)
    return wq_aug, wkT_aug, wvT_aug


def _augment(a):
    """Append a ones column along the feature (last) axis."""
    ones = jnp.ones(a.shape[:-1] + (1,), a.dtype)
    return jnp.concatenate([a, ones], axis=-1)


# ---------------------------------------------------------------------------
# Single-example wrapper: no grid — whole arrays in VMEM, one kernel body.
# ---------------------------------------------------------------------------
def multi_head_attention(x, y, z, packed_params, *, x_heads):
    wq_aug, wkT_aug, wvT_aug = packed_params
    nx, x_dim = x.shape
    ny, y_dim = y.shape
    nz, _ = z.shape
    x_head_dim = x_dim // x_heads
    seq_per_head = nx // x_heads
    assert ny == seq_per_head, "PyTorch matmul requires Ny == Nx // x_heads"

    xT_aug = _augment(x).T                                     # (x_dim+1, Nx)
    y_aug = _augment(y)                                        # (Ny, y_dim+1)
    z_aug = _augment(z)                                        # (Nz, z_dim+1)

    kernel = functools.partial(_mha_kernel, x_heads=x_heads,
                               x_head_dim=x_head_dim,
                               seq_per_head=seq_per_head)

    return pl.pallas_call(
        kernel,
        out_shape=jax.ShapeDtypeStruct((nz, y_dim), jnp.float32),
        scratch_shapes=[pltpu.VMEM((x_dim, y_dim), jnp.float32)],
    )(xT_aug, y_aug, z_aug, wq_aug, wkT_aug, wvT_aug)


# ---------------------------------------------------------------------------
# Batched wrapper: B independent (x, y, z) triples in one pipelined call.
# ---------------------------------------------------------------------------
def multi_head_attention_batched(xb, yb, zb, packed_params, *, x_heads):
    wq_aug, wkT_aug, wvT_aug = packed_params
    bsz, nx, x_dim = xb.shape
    _, ny, y_dim = yb.shape
    _, nz, z_dim = zb.shape
    x_head_dim = x_dim // x_heads
    seq_per_head = nx // x_heads
    assert ny == seq_per_head, "PyTorch matmul requires Ny == Nx // x_heads"

    xT_aug = jnp.swapaxes(_augment(xb), 1, 2)                  # (B, x_dim+1, Nx)
    y_aug = _augment(yb)                                       # (B, Ny, y_dim+1)
    z_aug = _augment(zb)                                       # (B, Nz, z_dim+1)
    xp1, yp1, zp1 = x_dim + 1, y_dim + 1, z_dim + 1

    kernel = functools.partial(_mha_kernel, x_heads=x_heads,
                               x_head_dim=x_head_dim,
                               seq_per_head=seq_per_head)

    return pl.pallas_call(
        kernel,
        out_shape=jax.ShapeDtypeStruct((bsz, nz, y_dim), jnp.float32),
        grid=(bsz,),
        in_specs=[
            pl.BlockSpec((None, xp1, nx), lambda b: (b, 0, 0)),
            pl.BlockSpec((None, ny, yp1), lambda b: (b, 0, 0)),
            pl.BlockSpec((None, nz, zp1), lambda b: (b, 0, 0)),
            pl.BlockSpec((x_head_dim, xp1), lambda b: (0, 0)),   # shared weights
            pl.BlockSpec((yp1, y_dim), lambda b: (0, 0)),
            pl.BlockSpec((zp1, x_dim), lambda b: (0, 0)),
        ],
        out_specs=pl.BlockSpec((None, nz, y_dim), lambda b: (b, 0, 0)),
        scratch_shapes=[pltpu.VMEM((x_dim, y_dim), jnp.float32)],
        compiler_params=pltpu.CompilerParams(
            dimension_semantics=("parallel",)),
    )(xT_aug, y_aug, z_aug, wq_aug, wkT_aug, wvT_aug)


# ---------------------------------------------------------------------------
# Pure-JAX reference of the PyTorch forward (for verification).
# ---------------------------------------------------------------------------
def _reference(x, y, z, params, *, x_heads):
    wq, bq, wk, bk, wv, bv = params
    nx, x_dim = x.shape
    x_head_dim = x_dim // x_heads
    q = x @ wq.T + bq                                    # (Nx, x_head_dim)
    k = y @ wk.T + bk                                    # (Ny, y_dim)  (y_heads=1)
    v = z @ wv.T + bv                                    # (Nz, x_dim)  (z_heads=1)
    q3 = q.reshape(x_heads, nx // x_heads, x_head_dim).transpose(0, 2, 1)
    scores = jnp.einsum('hdn,nk->hdk', q3, k)            # (x_heads, hd, y_dim)
    probs = jax.nn.softmax(scores.reshape(x_heads * x_head_dim, -1), axis=-1)
    return jnp.squeeze(v @ probs)                        # (Nz, y_dim)


if __name__ == "__main__":
    # Module config (y_heads = z_heads = 1 as required by the PyTorch views).
    X_DIM, Y_DIM, Z_DIM = 32, 32, 32
    X_HEADS, Y_HEADS, Z_HEADS = 4, 1, 1
    X_HEAD_DIM = X_DIM // X_HEADS                        # 8
    NX = 32                                              # x tokens
    NY = NX // X_HEADS                                   # 8 (required by matmul)
    NZ = 8                                               # z tokens
    B = 4                                                # batched-demo size

    key = jax.random.PRNGKey(0)
    (k_x, k_y, k_z, k_wq, k_bq, k_wk, k_bk, k_wv, k_bv,
     k_xb, k_yb, k_zb) = jax.random.split(key, 12)

    x = jax.random.normal(k_x, (NX, X_DIM), dtype=jnp.float32)
    y = jax.random.normal(k_y, (NY, Y_DIM), dtype=jnp.float32)
    z = jax.random.normal(k_z, (NZ, Z_DIM), dtype=jnp.float32)
    xb = jax.random.normal(k_xb, (B, NX, X_DIM), dtype=jnp.float32)
    yb = jax.random.normal(k_yb, (B, NY, Y_DIM), dtype=jnp.float32)
    zb = jax.random.normal(k_zb, (B, NZ, Z_DIM), dtype=jnp.float32)

    # Deterministic parameter init (PyTorch nn.Linear shapes: (out, in) + (out,)).
    def lin_init(kw, kb, out_f, in_f):
        bound = 1.0 / jnp.sqrt(in_f)
        w = jax.random.uniform(kw, (out_f, in_f), jnp.float32, -bound, bound)
        b = jax.random.uniform(kb, (out_f,), jnp.float32, -bound, bound)
        return w, b

    wq, bq = lin_init(k_wq, k_bq, X_HEAD_DIM, X_DIM)                    # linear_query
    wk, bk = lin_init(k_wk, k_bk, (Y_DIM // Y_HEADS) * Y_HEADS, Y_DIM)  # linear_key
    wv, bv = lin_init(k_wv, k_bv, X_HEAD_DIM * X_HEADS, Z_DIM)          # linear_value
    params = (wq, bq, wk, bk, wv, bv)
    packed = pack_params(params)                         # one-time bias folding

    mha = jax.jit(functools.partial(multi_head_attention, x_heads=X_HEADS))
    mha_b = jax.jit(functools.partial(multi_head_attention_batched,
                                      x_heads=X_HEADS))

    # Single example (tolerance accounts for the approx EUP reciprocal).
    out = jax.block_until_ready(mha(x, y, z, packed))
    ref = _reference(x, y, z, params, x_heads=X_HEADS)
    assert out.shape == (NZ, Y_DIM), out.shape
    assert jnp.allclose(out, ref, atol=2e-3, rtol=2e-3), \
        f"max err {float(jnp.max(jnp.abs(out - ref)))}"

    # Batched (grid over B, parallel axis -> both TCs on v7x).
    out_b = jax.block_until_ready(mha_b(xb, yb, zb, packed))
    ref_b = jax.vmap(lambda a, b_, c: _reference(a, b_, c, params,
                                                 x_heads=X_HEADS))(xb, yb, zb)
    assert out_b.shape == (B, NZ, Y_DIM), out_b.shape
    assert jnp.allclose(out_b, ref_b, atol=2e-3, rtol=2e-3), \
        f"max err {float(jnp.max(jnp.abs(out_b - ref_b)))}"

    print("KERNEL_OK")
</pallas_src>

<mosaic_0001>
module attributes {stable_mosaic.version = 11 : i64} {
  func.func @_mha_kernel(%arg0: memref<33x32xf32, #tpu.memory_space<vmem>>, %arg1: memref<8x33xf32, #tpu.memory_space<vmem>>, %arg2: memref<8x33xf32, #tpu.memory_space<vmem>>, %arg3: memref<8x33xf32, #tpu.memory_space<vmem>>, %arg4: memref<33x32xf32, #tpu.memory_space<vmem>>, %arg5: memref<33x32xf32, #tpu.memory_space<vmem>>, %arg6: memref<8x32xf32, #tpu.memory_space<vmem>>, %arg7: memref<32x32xf32, #tpu.memory_space<vmem>>) attributes {dimension_semantics = [], scalar_prefetch = 0 : i64, scratch_operands = 1 : i64, tpu.core_type = #tpu.core_type<tc>} {
    %c0 = arith.constant 0 : index
    %c0_0 = arith.constant 0 : index
    %0 = vector.load %arg3[%c0, %c0_0] : memref<8x33xf32, #tpu.memory_space<vmem>>, vector<8x33xf32>
    %c0_1 = arith.constant 0 : index
    %c0_2 = arith.constant 0 : index
    %1 = vector.load %arg0[%c0_1, %c0_2] : memref<33x32xf32, #tpu.memory_space<vmem>>, vector<33x32xf32>
    %cst = arith.constant dense<0.000000e+00> : vector<8x32xf32>
    %2 = tpu.matmul %0, %1, %cst {dimension_numbers = #tpu.dot_dimension_numbers<[1], [0], [0], [1], [0, 0, 1, 1], [], []>} : vector<8x33xf32>, vector<33x32xf32>, vector<8x32xf32> -> vector<8x32xf32>
    %c0_3 = arith.constant 0 : index
    %c0_4 = arith.constant 0 : index
    %3 = vector.load %arg1[%c0_3, %c0_4] : memref<8x33xf32, #tpu.memory_space<vmem>>, vector<8x33xf32>
    %c0_5 = arith.constant 0 : index
    %c0_6 = arith.constant 0 : index
    %4 = vector.load %arg4[%c0_5, %c0_6] : memref<33x32xf32, #tpu.memory_space<vmem>>, vector<33x32xf32>
    %cst_7 = arith.constant dense<0.000000e+00> : vector<8x32xf32>
    %5 = tpu.matmul %3, %4, %cst_7 {dimension_numbers = #tpu.dot_dimension_numbers<[1], [0], [0], [1], [0, 0, 1, 1], [], []>} : vector<8x33xf32>, vector<33x32xf32>, vector<8x32xf32> -> vector<8x32xf32>
    %c0_8 = arith.constant 0 : index
    %c0_9 = arith.constant 0 : index
    %6 = vector.load %arg2[%c0_8, %c0_9] : memref<8x33xf32, #tpu.memory_space<vmem>>, vector<8x33xf32>
    %c0_10 = arith.constant 0 : index
    %c0_11 = arith.constant 0 : index
    %7 = vector.load %arg5[%c0_10, %c0_11] : memref<33x32xf32, #tpu.memory_space<vmem>>, vector<33x32xf32>
    %cst_12 = arith.constant dense<0.000000e+00> : vector<8x32xf32>
    %8 = tpu.matmul %6, %7, %cst_12 {dimension_numbers = #tpu.dot_dimension_numbers<[1], [0], [0], [1], [0, 0, 1, 1], [], []>} : vector<8x33xf32>, vector<33x32xf32>, vector<8x32xf32> -> vector<8x32xf32>
    %9 = vector.extract_strided_slice %2 {offsets = [0, 0], sizes = [8, 8], strides = [1, 1]} : vector<8x32xf32> to vector<8x8xf32>
    %cst_13 = arith.constant dense<0.000000e+00> : vector<8x32xf32>
    %10 = tpu.matmul %9, %5, %cst_13 {dimension_numbers = #tpu.dot_dimension_numbers<[1], [0], [0], [1], [0, 0, 1, 1], [], []>} : vector<8x8xf32>, vector<8x32xf32>, vector<8x32xf32> -> vector<8x32xf32>
    %c0_14 = arith.constant 0 : index
    %c0_15 = arith.constant 0 : index
    %11 = vector.load %arg7[%c0_14, %c0_15] : memref<32x32xf32, #tpu.memory_space<vmem>>, vector<8x32xf32>
    tpu.vector_store %arg7[%c0_14, %c0_15], %10 {strides = array<i32>} : memref<32x32xf32, #tpu.memory_space<vmem>>, vector<8x32xf32>,
    %12 = vector.extract_strided_slice %2 {offsets = [0, 8], sizes = [8, 8], strides = [1, 1]} : vector<8x32xf32> to vector<8x8xf32>
    %cst_16 = arith.constant dense<0.000000e+00> : vector<8x32xf32>
    %13 = tpu.matmul %12, %5, %cst_16 {dimension_numbers = #tpu.dot_dimension_numbers<[1], [0], [0], [1], [0, 0, 1, 1], [], []>} : vector<8x8xf32>, vector<8x32xf32>, vector<8x32xf32> -> vector<8x32xf32>
    %c8 = arith.constant 8 : index
    %c0_17 = arith.constant 0 : index
    %14 = vector.load %arg7[%c8, %c0_17] : memref<32x32xf32, #tpu.memory_space<vmem>>, vector<8x32xf32>
    tpu.vector_store %arg7[%c8, %c0_17], %13 {strides = array<i32>} : memref<32x32xf32, #tpu.memory_space<vmem>>, vector<8x32xf32>,
    %15 = vector.extract_strided_slice %2 {offsets = [0, 16], sizes = [8, 8], strides = [1, 1]} : vector<8x32xf32> to vector<8x8xf32>
    %cst_18 = arith.constant dense<0.000000e+00> : vector<8x32xf32>
    %16 = tpu.matmul %15, %5, %cst_18 {dimension_numbers = #tpu.dot_dimension_numbers<[1], [0], [0], [1], [0, 0, 1, 1], [], []>} : vector<8x8xf32>, vector<8x32xf32>, vector<8x32xf32> -> vector<8x32xf32>
    %c16 = arith.constant 16 : index
    %c0_19 = arith.constant 0 : index
    %17 = vector.load %arg7[%c16, %c0_19] : memref<32x32xf32, #tpu.memory_space<vmem>>, vector<8x32xf32>
    tpu.vector_store %arg7[%c16, %c0_19], %16 {strides = array<i32>} : memref<32x32xf32, #tpu.memory_space<vmem>>, vector<8x32xf32>,
    %18 = vector.extract_strided_slice %2 {offsets = [0, 24], sizes = [8, 8], strides = [1, 1]} : vector<8x32xf32> to vector<8x8xf32>
    %cst_20 = arith.constant dense<0.000000e+00> : vector<8x32xf32>
    %19 = tpu.matmul %18, %5, %cst_20 {dimension_numbers = #tpu.dot_dimension_numbers<[1], [0], [0], [1], [0, 0, 1, 1], [], []>} : vector<8x8xf32>, vector<8x32xf32>, vector<8x32xf32> -> vector<8x32xf32>
    %c24 = arith.constant 24 : index
    %c0_21 = arith.constant 0 : index
    %20 = vector.load %arg7[%c24, %c0_21] : memref<32x32xf32, #tpu.memory_space<vmem>>, vector<8x32xf32>
    tpu.vector_store %arg7[%c24, %c0_21], %19 {strides = array<i32>} : memref<32x32xf32, #tpu.memory_space<vmem>>, vector<8x32xf32>,
    %c0_22 = arith.constant 0 : index
    %c0_23 = arith.constant 0 : index
    %21 = vector.load %arg7[%c0_22, %c0_23] : memref<32x32xf32, #tpu.memory_space<vmem>>, vector<32x32xf32>
    %cst_24 = arith.constant dense<0xFF800000> : vector<32xf32>
    %22 = vector.multi_reduction <maximumf>, %21, %cst_24 [1] : vector<32x32xf32> to vector<32xf32>
    %23 = vector.shape_cast %22 : vector<32xf32> to vector<32x1xf32>
    %24 = vector.broadcast %23 : vector<32x1xf32> to vector<32x32xf32>
    %25 = arith.subf %21, %24 : vector<32x32xf32>
    %26 = math.exp %25 : vector<32x32xf32>
    %cst_25 = arith.constant dense<0.000000e+00> : vector<32xf32>
    %27 = vector.multi_reduction <add>, %26, %cst_25 [1] : vector<32x32xf32> to vector<32xf32>
    %28 = vector.shape_cast %27 : vector<32xf32> to vector<32x1xf32>
    %29 = tpu.reciprocal %28 {approx = true} : vector<32x1xf32> -> vector<32x1xf32>
    %30 = vector.broadcast %29 : vector<32x1xf32> to vector<32x32xf32>
    %31 = arith.mulf %26, %30 : vector<32x32xf32>
    %cst_26 = arith.constant dense<0.000000e+00> : vector<8x32xf32>
    %32 = tpu.matmul %8, %31, %cst_26 {dimension_numbers = #tpu.dot_dimension_numbers<[1], [0], [0], [1], [0, 0, 1, 1], [], []>} : vector<8x32xf32>, vector<32x32xf32>, vector<8x32xf32> -> vector<8x32xf32>
    %c0_27 = arith.constant 0 : index
    %c0_28 = arith.constant 0 : index
    %33 = vector.load %arg6[%c0_27, %c0_28] : memref<8x32xf32, #tpu.memory_space<vmem>>, vector<8x32xf32>
    tpu.vector_store %arg6[%c0_27, %c0_28], %32 {strides = array<i32>} : memref<8x32xf32, #tpu.memory_space<vmem>>, vector<8x32xf32>,
    return
  }
}

</mosaic_0001>

<bundles_post_ra>
// kernel: multi_head_attention.1
= control target key start
LH: loop header
LB: loop body
LE: loop exit
PB: predicated region body
PF: predicated region fallthrough
CT: control target
= control target key end

     0   :  { %vm34_vm0 = vcmask 1040384   ;;  %s488_s0 = inlined_call_operand.vmem [shape: f32[33,32], index: 0, kind: input, shape index: {}]   ;;  %s489_s1 = inlined_call_operand.vmem [shape: f32[8,33], index: 1, kind: input, shape index: {}]   ;;  %s490_s2 = inlined_call_operand.vmem [shape: f32[8,33], index: 2, kind: input, shape index: {}]   ;;  %s491_s3 = inlined_call_operand.vmem [shape: f32[8,33], index: 3, kind: input, shape index: {}]   ;;  %s492_s4 = inlined_call_operand.vmem [shape: f32[33,32], index: 4, kind: input, shape index: {}]   ;;  %s493_s5 = inlined_call_operand.vmem [shape: f32[33,32], index: 5, kind: input, shape index: {}]   ;;  %s494_s6 = inlined_call_operand.hbm [shape: f32[8,32], index: 6, kind: output, shape index: {}]  }
   0x1   :  { %v29_v0 = vld [vmem:[%s488_s0 + $0x20] sm:$0x1]  ;;  %v28_v2 = vld [vmem:[%s488_s0 + $0x18] sm:$0xff]  ;;  %v27_v4 = vld [vmem:[%s488_s0 + $0x10] sm:$0xff] }
   0x2   :  { %v63_v1 = vld [vmem:[%s492_s4 + $0x20] sm:$0x1]  ;;  %311 = vmatpush.msk.msra.mxu0 %vm34_vm0, %v29_v0  ;;  %v62_v3 = vld [vmem:[%s492_s4 + $0x18] sm:$0xff]  ;;  %v61_v5 = vld [vmem:[%s492_s4 + $0x10] sm:$0xff] }
   0x3   :  { %313 = vmatpush.msk.msra.mxu1 %vm34_vm0, %v63_v1  ;;  %v26_v6 = vld [vmem:[%s488_s0 + $0x8] sm:$0xff] }
   0x4   :  { %50 = vmatpush.msra.mxu0 %v28_v2  ;;  %v60_v7 = vld [vmem:[%s492_s4 + $0x8] sm:$0xff] }
   0x5   :  { %82 = vmatpush.msra.mxu1 %v62_v3 }
   0x6   :  { %11 = vsyncpa [#allocation4], 0  ;;  %51 = vmatpush.msra.mxu0 %v27_v4  ;;  %v25_v8 = vld [vmem:[%s488_s0] sm:$0xff]  ;;  %vm30_vm1 = vcmask 269312   ;;  %vm122_vm2 = vcmask 64512   ;;  %s368_s0 = smov 112  }
   0x7   :  { %83 = vmatpush.msra.mxu1 %v61_v5  ;;  %v59_v9 = vld [vmem:[%s492_s4] sm:$0xff]  ;;  %s369_s4 = smov 120   ;;  %vm146_vm3 = vcmask 261120   ;;  %v94_v30 = vld [vmem:[%s493_s5 + $0x18] sm:$0xff]  ;;  %v93_v31 = vld [vmem:[%s493_s5 + $0x10] sm:$0xff]  ;;  %s302_s10 = sshll.u32 %s494_s6, 4  ;;  %s303_s10 = int_to_ptr.hbm [resolvable:$true] %s302_s10 }
   0x8   :  { %52 = vmatpush.msra.mxu0 %v26_v6  ;;  %v24_v10 = vld [vmem:[%s491_s3] sm:$0xff]  ;;  %v92_v32 = vld [vmem:[%s493_s5 + $0x8] sm:$0xff] }
   0x9   :  { %84 = vmatpush.msra.mxu1 %v60_v7  ;;  %v58_v11 = vld [vmem:[%s489_s1] sm:$0xff]  ;;  %s370_s1 = smov 104  }
   0xa   :  { %53 = vmatpush.msra.mxu0 %v25_v8  ;;  %v95_v29 = vld [vmem:[%s493_s5 + $0x20] sm:$0x1] }
   0xb   :  { %85 = vmatpush.msra.mxu1 %v59_v9  ;;  %312 = vmatmul.msk.f32.vlgmr.msra.gmra.mxu0 %vm30_vm1, %v24_v10  ;;  %v91_v33 = vld [vmem:[%s493_s5] sm:$0xff] }
   0xc   :  { %314 = vmatmul.msk.f32.vlgmr.msra.gmra.mxu1 %vm30_vm1, %v58_v11  ;;  %315 = vmatpush.msk.msra.mxu2 %vm34_vm0, %v95_v29  ;;  %v90_v34 = vld [vmem:[%s490_s2] sm:$0xff]  ;;  %s371_s2 = smov [#allocation3]  }
   0xd   :  { %s300_s5 = sshll.u32 %s371_s2, 4  ;;  %s301_s5 = int_to_ptr.vmem [resolvable:$true] %s300_s5 }
   0xe   :  { %114 = vmatpush.msra.mxu2 %v94_v30 }
  0x10   :  { %115 = vmatpush.msra.mxu2 %v93_v31 }
  0x12   :  { %116 = vmatpush.msra.mxu2 %v92_v32 }
  0x14   :  { %117 = vmatpush.msra.mxu2 %v91_v33 }
  0x15   :  { %316 = vmatmul.msk.f32.vlgmr.msra.gmra.mxu2 %vm30_vm1, %v90_v34 }
  0x88   :  { %v55_v12 = vpop.f32.mrf.mxu0 }
  0x89   :  { %v87_v13 = vpop.f32.mrf.mxu1  ;;  %173 = vrot.lane.b32.xlu1 %v55_v12, %s368_s0  ;;  %148 = vrot.lane.b32.xlu0 %v55_v12, %s369_s4 }
  0x8a   :  { %141 = vmatpush.msra.mxu3 %v87_v13  ;;  %192 = vmatpush.msrb.mxu0 %v87_v13 }
  0x8b   :  { %317 = vmatmul.msk.f32.vlgmr.msra.gmra.mxu3 %vm122_vm2, %v55_v12  ;;  %217 = vmatpush.msrb.mxu1 %v87_v13 }
  0x8c   :  { %167 = vmatpush.msrb.mxu3 %v87_v13 }
  0x91   :  { %198 = vrot.lane.b32.xlu0 %v55_v12, %s370_s1 }
  0x98   :  { %v119_v3 = vpop.f32.mrf.mxu2 }
  0xfb   :  { %v174_v14 = vpop.permute.xlu1 %173  ;;  %v149_v15 = vpop.permute.xlu0 %148 }
  0xfc   :  { %319 = vmatmul.msk.f32.vlgmr.msrb.gmra.mxu0 %vm122_vm2, %v174_v14  ;;  %318 = vmatmul.msk.f32.vlgmr.msrb.gmra.mxu3 %vm122_vm2, %v149_v15 }
 0x103   :  { %v199_v16 = vpop.permute.xlu0 %198 }
 0x104   :  { %320 = vmatmul.msk.f32.vlgmr.msrb.gmra.mxu1 %vm122_vm2, %v199_v16 }
 0x10e   :  { %v143_v17 = vpop.f32.mrf.mxu3 }
 0x10f   :  { %147 = vst.msk [vmem:[#allocation2] sm:$0xff] %vm146_vm3, %v143_v17 }
 0x116   :  { %v223_v18 = vld [vmem:[#allocation2] sm:$0xff] }
 0x117   :  { %v227_v19 = vsel %vm146_vm3, %v223_v18, -inf }
 0x118   :  { %228 = vmax.xlane.f32.xlu0 %v227_v19 }
 0x179   :  { %v194_v20 = vpop.f32.mrf.mxu0 }
 0x17a   :  { %197 = vst.msk [vmem:[#allocation2 + $0x10] sm:$0xff] %vm146_vm3, %v194_v20 }
 0x17f   :  { %v169_v21 = vpop.f32.mrf.mxu3 }
 0x180   :  { %172 = vst.msk [vmem:[#allocation2 + $0x8] sm:$0xff] %vm146_vm3, %v169_v21 }
 0x181   :  { %v225_v22 = vld [vmem:[#allocation2 + $0x10] sm:$0xff]  ;;  %v219_v23 = vpop.f32.mrf.mxu1 }
 0x182   :  { %v233_v24 = vsel %vm146_vm3, %v225_v22, -inf  ;;  %222 = vst.msk [vmem:[#allocation2 + $0x18] sm:$0xff] %vm146_vm3, %v219_v23 }
 0x183   :  { %234 = vmax.xlane.f32.xlu2 %v233_v24 }
 0x187   :  { %v224_v25 = vld [vmem:[#allocation2 + $0x8] sm:$0xff] }
 0x188   :  { %v230_v27 = vsel %vm146_vm3, %v224_v25, -inf }
 0x189   :  { %v226_v26 = vld [vmem:[#allocation2 + $0x18] sm:$0xff] }
 0x18a   :  { %v236_v28 = vsel %vm146_vm3, %v226_v26, -inf }
 0x18b   :  { %231 = vmax.xlane.f32.xlu2 %v230_v27  ;;  %237 = vmax.xlane.f32.xlu1 %v236_v28  ;;  %v229_v46 = vpop.xlane.xlu0 %228 }
 0x18c   :  { %v239_v48 = vsub.f32 %v223_v18, %v229_v46 }
 0x18e   :  { %v243_v50 = vmul.f32 1.442695, %v239_v48 }
 0x1f6   :  { %v235_v35 = vpop.xlane.xlu2 %234 }
 0x1f7   :  { %v241_v38 = vsub.f32 %v225_v22, %v235_v35 }
 0x1f9   :  { %v247_v40 = vmul.f32 1.442695, %v241_v38 }
 0x1fe   :  { %v238_v36 = vpop.xlane.xlu1 %237  ;;  %v232_v41 = vpop.xlane.xlu2 %231 }
 0x1ff   :  { %v242_v37 = vsub.f32 %v226_v26, %v238_v36  ;;  %v240_v43 = vsub.f32 %v224_v25, %v232_v41 }
 0x201   :  { %v249_v39 = vmul.f32 1.442695, %v242_v37  ;;  %v245_v45 = vmul.f32 1.442695, %v240_v43 }
 0x203   :  { %326 = vpow2.f32 %v249_v39 }
 0x204   :  { %328 = vpow2.f32 %v247_v40 }
 0x205   :  { %330 = vpow2.f32 %v245_v45 }
 0x206   :  { %332 = vpow2.f32 %v243_v50 }
 0x209   :  { %v327_v42 = vpop.eup %326 }
 0x20a   :  { %v260_v44 = vsel %vm146_vm3, %v327_v42, 0.0  ;;  %v329_v47 = vpop.eup %328 }
 0x20b   :  { %261 = vadd.xlane.f32.xlu2 %v260_v44  ;;  %v257_v49 = vsel %vm146_vm3, %v329_v47, 0.0  ;;  %v331_v51 = vpop.eup %330 }
 0x20c   :  { %v254_v52 = vsel %vm146_vm3, %v331_v51, 0.0  ;;  %v333_v53 = vpop.eup %332 }
 0x20d   :  { %v251_v54 = vsel %vm146_vm3, %v333_v53, 0.0 }
 0x213   :  { %258 = vadd.xlane.f32.xlu2 %v257_v49 }
 0x21b   :  { %255 = vadd.xlane.f32.xlu2 %v254_v52 }
 0x223   :  { %252 = vadd.xlane.f32.xlu2 %v251_v54 }
 0x27e   :  { %v262_v55 = vpop.xlane.xlu2 %261 }
 0x27f   :  { %334 = vrcp.f32 %v262_v55 }
 0x285   :  { %v335_v56 = vpop.eup %334 }
 0x286   :  { %v259_v57 = vpop.xlane.xlu2 %258  ;;  %v270_v58 = vmul.f32 %v335_v56, %v327_v42 }
 0x287   :  { %336 = vrcp.f32 %v259_v57 }
 0x288   :  { %286 = vmatpush.msrb.mxu2 %v270_v58 }
 0x28d   :  { %v337_v59 = vpop.eup %336 }
 0x28e   :  { %v256_v60 = vpop.xlane.xlu2 %255  ;;  %v269_v61 = vmul.f32 %v337_v59, %v329_v47 }
 0x28f   :  { %338 = vrcp.f32 %v256_v60 }
 0x290   :  { %287 = vmatpush.msrb.mxu2 %v269_v61 }
 0x295   :  { %v339_v62 = vpop.eup %338 }
 0x296   :  { %v253_v63 = vpop.xlane.xlu2 %252  ;;  %v268_v0 = vmul.f32 %v339_v62, %v331_v51 }
 0x297   :  { %340 = vrcp.f32 %v253_v63 }
 0x298   :  { %288 = vmatpush.msrb.mxu2 %v268_v0 }
 0x29d   :  { %v341_v1 = vpop.eup %340 }
 0x29e   :  { %v267_v2 = vmul.f32 %v341_v1, %v333_v53 }
 0x2a0   :  { %289 = vmatpush.msrb.mxu2 %v267_v2 }
 0x2a1   :  { %321 = vmatmul.msk.f32.vlgmr.msrb.gmra.mxu2 %vm146_vm3, %v119_v3 }
 0x324   :  { %v291_v4 = vpop.f32.mrf.mxu2 }
 0x325   :  { %294 = vst.msk [vmem:[#allocation3] sm:$0xff] %vm146_vm3, %v291_v4 }
 0x326   :  { %305 = dma.vmem_to_hbm [thread:$0]  %s301_s5, 128, %s303_s10, [#allocation4]  }
 0x327   :  { %366 = dma.done.wait [#allocation4], 128  }
 0x328   :  { %367 = vsyncadd [#allocation4], 4294967168 }
 0x329   :  { %310 = vsyncpa [#allocation4], 1 }

</bundles_post_ra>
